<compile_context>
chip_gen: v6e
topology: v6e:2x2x1
jax: 0.10.0
libtpu: 0.0.40
codegen_flags: <defaults>
</compile_context>

<pallas_src>
import jax
import jax.numpy as jnp
from jax.experimental import pallas as pl
from jax.experimental.pallas import tpu as pltpu


def _round_up(x, m):
    return ((x + m - 1) // m) * m


def _sublane_pack(dtype):
    # (8,128) tiling for 32-bit, (16,128) for 16-bit, (32,128) for 8-bit.
    return max(8, 32 // jnp.dtype(dtype).itemsize)


def _vmem_capacity_bytes():
    try:
        return int(pltpu.get_tpu_info().vmem_capacity_bytes)
    except Exception:
        return 64 * 1024 * 1024  # conservative: v7x per-TensorCore VMEM


# ---------------------------------------------------------------------------
# Fast path: direct strided HBM->HBM DMA (no VMEM staging, no cast needed).
# ---------------------------------------------------------------------------
def _make_dma_kernel(in_channels, batch_spans):
    n_in = len(in_channels)

    def kernel(*refs):
        in_refs = refs[:n_in]
        out_ref = refs[n_in]
        sems = refs[n_in + 1]
        copies = []
        sem_idx = 0
        off = 0
        for r, c in zip(in_refs, in_channels):
            for (bs, bl) in batch_spans:
                cp = pltpu.make_async_copy(
                    r.at[bs:bs + bl],
                    out_ref.at[bs:bs + bl, off:off + c, :],
                    sems.at[sem_idx],
                )
                cp.start()
                copies.append(cp)
                sem_idx += 1
            off += c
        # All copies are issued before any wait, so they run concurrently on
        # the DMA engines (which is what saturates HBM bandwidth, not the TC
        # issuing them).
        for cp in copies:
            cp.wait()

    return kernel


def _concat_dma(flat, in_channels, c_total, n, L, dtype, total_bytes):
    n_in = len(flat)
    # Split each input's copy along batch into a few chunks so several DMA
    # engines work concurrently even with very few inputs.
    nsplit = max(1, min(n, -(-8 // n_in)))
    chunk = -(-n // nsplit)
    spans = []
    s = 0
    while s < n:
        e = min(n, s + chunk)
        spans.append((s, e - s))
        s = e
    n_copies = n_in * len(spans)

    kernel = _make_dma_kernel(in_channels, spans)
    return pl.pallas_call(
        kernel,
        out_shape=jax.ShapeDtypeStruct((n, c_total, L), dtype),
        in_specs=[pl.BlockSpec(memory_space=pl.ANY)] * n_in,
        out_specs=pl.BlockSpec(memory_space=pl.ANY),
        scratch_shapes=[pltpu.SemaphoreType.DMA((n_copies,))],
        cost_estimate=pl.CostEstimate(
            flops=0, transcendentals=0, bytes_accessed=total_bytes
        ),
    )(*flat)


# ---------------------------------------------------------------------------
# Fallback path: VMEM-staged copy with in-kernel dtype promotion.
# ---------------------------------------------------------------------------
def _make_copy_kernel(in_channels):
    def kernel(*refs):
        in_refs = refs[:-1]
        out_ref = refs[-1]
        off = 0
        for r, c in zip(in_refs, in_channels):
            # Full-lane-width copy; the dtype promotion happens here (VPU
            # filler on a memory-bound copy) instead of a separate XLA pass.
            # NOTE: channel offsets that are not multiples of the sublane
            # pack only cost a few XLU sublane shifts (slack in a copy).
            out_ref[:, off:off + c, :] = r[...].astype(out_ref.dtype)
            off += c
    return kernel


def _concat_staged(flat, in_channels, c_total, n, L, dtype, total_bytes):
    vmem_cap = _vmem_capacity_bytes()
    # ~1/5 of VMEM per double-buffered working set; request half of physical
    # VMEM as the limit (32 MiB on v7x, 64 MiB on v5e/v6e) so blocks plus
    # Mosaic's internal scratch always fit with headroom.
    block_budget = max(2 * 1024 * 1024, vmem_cap // 5)
    vmem_limit = vmem_cap // 2

    # Bytes of one double-buffered pipeline stage per (batch row, lane elem),
    # with every channel count rounded up to its sublane pack (VMEM blocks
    # pad the second-to-last dim).
    out_itemsize = jnp.dtype(dtype).itemsize
    stage_bytes = _round_up(c_total, _sublane_pack(dtype)) * out_itemsize
    for x, c in zip(flat, in_channels):
        stage_bytes += (
            _round_up(c, _sublane_pack(x.dtype)) * jnp.dtype(x.dtype).itemsize
        )
    stage_bytes *= 2  # double buffering

    # Lane tile: largest 128-multiple that fits the budget (>=512 lanes is
    # already in the >85%-of-HBM-roofline regime); full L when it fits.
    lane_budget = max(128, block_budget // max(1, stage_bytes))
    if L <= lane_budget:
        lt = L
    else:
        lt = max(128, (lane_budget // 128) * 128)
    # Batch tile from what is left of the budget; tails handled by cdiv.
    bt = max(1, min(n, block_budget // max(1, stage_bytes * lt)))

    grid = (pl.cdiv(n, bt), pl.cdiv(L, lt))
    kernel = _make_copy_kernel(in_channels)
    in_specs = [
        pl.BlockSpec((bt, c, lt), lambda b, l: (b, 0, l)) for c in in_channels
    ]
    out_specs = pl.BlockSpec((bt, c_total, lt), lambda b, l: (b, 0, l))

    return pl.pallas_call(
        kernel,
        out_shape=jax.ShapeDtypeStruct((n, c_total, L), dtype),
        grid=grid,
        in_specs=in_specs,
        out_specs=out_specs,
        compiler_params=pltpu.CompilerParams(
            dimension_semantics=("parallel", "parallel"),
            vmem_limit_bytes=vmem_limit,
        ),
        cost_estimate=pl.CostEstimate(
            flops=0, transcendentals=0, bytes_accessed=total_bytes
        ),
    )(*flat)


# ---------------------------------------------------------------------------
# Public wrapper: Concat(crop).forward(xs)
# ---------------------------------------------------------------------------
def concat_pallas(xs, crop=False):
    """Equivalent of Concat(crop).forward(xs) for a list of NC[spatial...] arrays."""
    assert len(xs) >= 1
    n = int(xs[0].shape[0])
    assert all(int(x.shape[0]) == n for x in xs), "batch dims must match"
    ndim = xs[0].ndim
    assert all(x.ndim == ndim for x in xs) and ndim >= 2
    # torch.cat-style dtype promotion for mixed-dtype inputs.
    dtype = jnp.result_type(*[x.dtype for x in xs])
    spatial = [tuple(int(d) for d in x.shape[2:]) for x in xs]

    if crop and ndim > 2:
        min_hw = tuple(min(s[d] for s in spatial) for d in range(ndim - 2))
    else:
        assert all(s == spatial[0] for s in spatial), "spatial shapes must match"
        min_hw = spatial[0]

    # 1) Static center-crop of mismatched inputs (single XLA slice pass); the
    #    dtype cast is NOT done here -- it happens inside the kernel.
    # TODO(synk): fold the crop into the input BlockSpec index_map to save one
    # extra HBM pass for mismatched inputs.
    cropped = []
    for x, s in zip(xs, spatial):
        if s != min_hw:
            sl = (slice(None), slice(None)) + tuple(
                slice((sd - m) // 2, (sd - m) // 2 + m)
                for sd, m in zip(s, min_hw)
            )
            x = x[sl]
        cropped.append(x)

    # 2) Lane-dense layout: collapse spatial dims into the last axis.
    L = 1
    for m in min_hw:
        L *= int(m)
    in_channels = [int(x.shape[1]) for x in cropped]
    c_total = sum(in_channels)
    flat = [x.reshape(n, c, L) for x, c in zip(cropped, in_channels)]

    total_bytes = sum(int(x.size) * jnp.dtype(x.dtype).itemsize for x in flat)
    total_bytes += n * c_total * L * jnp.dtype(dtype).itemsize

    # 3) Fast path when no cast is needed and every channel slab is aligned to
    #    the HBM sublane tiling -> direct strided HBM->HBM DMA, zero VMEM.
    pack = _sublane_pack(dtype)
    dma_ok = all(x.dtype == dtype for x in flat) and all(
        c % pack == 0 for c in in_channels
    )
    if dma_ok:
        out_flat = _concat_dma(flat, in_channels, c_total, n, L, dtype, total_bytes)
    else:
        out_flat = _concat_staged(flat, in_channels, c_total, n, L, dtype, total_bytes)

    return out_flat.reshape((n, c_total) + tuple(min_hw))


def _concat_ref(xs, crop=False):
    """Pure-JAX reference mirroring the PyTorch forward."""
    if crop and xs[0].ndim > 2:
        min_hw = tuple(
            min(x.shape[2 + d] for x in xs) for d in range(xs[0].ndim - 2)
        )
        cropped = []
        for x in xs:
            sl = (slice(None), slice(None)) + tuple(
                slice((s - m) // 2, (s - m) // 2 + m)
                for s, m in zip(x.shape[2:], min_hw)
            )
            cropped.append(x[sl])
        xs = cropped
    return jnp.concatenate(xs, axis=1)


if __name__ == "__main__":
    key = jax.random.PRNGKey(0)
    k1, k2, k3, k4, k5 = jax.random.split(key, 5)

    # 1) crop=True, misaligned channel counts (4, 6) -> VMEM-staged path,
    #    spatial shapes center-cropped to (12, 12).
    x1 = jax.random.normal(k1, (2, 4, 16, 16), dtype=jnp.float32)
    x2 = jax.random.normal(k2, (2, 6, 12, 12), dtype=jnp.float32)
    out = jax.block_until_ready(concat_pallas([x1, x2], crop=True))
    ref = _concat_ref([x1, x2], crop=True)
    assert out.shape == (2, 10, 12, 12), out.shape
    assert jnp.array_equal(out, ref), "crop=True mismatch"

    # 2) crop=False, aligned channels (8, 8) & same dtype -> direct strided
    #    HBM->HBM DMA path (zero VMEM staging).
    x3 = jax.random.normal(k3, (2, 8, 16, 16), dtype=jnp.float32)
    x4 = jax.random.normal(k4, (2, 8, 16, 16), dtype=jnp.float32)
    out = jax.block_until_ready(concat_pallas([x3, x4], crop=False))
    ref = _concat_ref([x3, x4], crop=False)
    assert out.shape == (2, 16, 16, 16), out.shape
    assert jnp.array_equal(out, ref), "DMA-path mismatch"

    # 3) mixed dtypes (f32 + bf16) -> in-kernel promotion on the staged path.
    x5 = jax.random.normal(k5, (2, 8, 16, 16), dtype=jnp.bfloat16)
    out = jax.block_until_ready(concat_pallas([x3, x5], crop=False))
    ref = _concat_ref([x3, x5], crop=False)
    assert out.shape == (2, 16, 16, 16) and out.dtype == jnp.float32
    assert jnp.array_equal(out, ref), "mixed-dtype mismatch"

    print("KERNEL_OK")
</pallas_src>

<mosaic_0001>
module attributes {stable_mosaic.version = 11 : i64} {
  func.func @kernel(%arg0: i32, %arg1: i32, %arg2: memref<2x4x144xf32, #tpu.memory_space<vmem>>, %arg3: memref<2x6x144xf32, #tpu.memory_space<vmem>>, %arg4: memref<2x10x144xf32, #tpu.memory_space<vmem>>) attributes {dimension_semantics = [#tpu.dimension_semantics<parallel>, #tpu.dimension_semantics<parallel>], iteration_bounds = array<i64: 1, 1>, scalar_prefetch = 0 : i64, scratch_operands = 0 : i64, tpu.core_type = #tpu.core_type<tc>, window_params = [{transform_indices = @transform_0, window_bounds = array<i64: 2, 4, 144>}, {transform_indices = @transform_1, window_bounds = array<i64: 2, 6, 144>}, {transform_indices = @transform_2, window_bounds = array<i64: 2, 10, 144>}]} {
    %c0 = arith.constant 0 : index
    %c0_0 = arith.constant 0 : index
    %c0_1 = arith.constant 0 : index
    %0 = vector.load %arg2[%c0, %c0_0, %c0_1] : memref<2x4x144xf32, #tpu.memory_space<vmem>>, vector<2x4x144xf32>
    %c0_2 = arith.constant 0 : index
    %c0_3 = arith.constant 0 : index
    %c0_4 = arith.constant 0 : index
    %1 = vector.load %arg4[%c0_2, %c0_3, %c0_4] : memref<2x10x144xf32, #tpu.memory_space<vmem>>, vector<2x4x144xf32>
    tpu.vector_store %arg4[%c0_2, %c0_3, %c0_4], %0 {strides = array<i32>} : memref<2x10x144xf32, #tpu.memory_space<vmem>>, vector<2x4x144xf32>,
    %c0_5 = arith.constant 0 : index
    %c0_6 = arith.constant 0 : index
    %c0_7 = arith.constant 0 : index
    %2 = vector.load %arg3[%c0_5, %c0_6, %c0_7] : memref<2x6x144xf32, #tpu.memory_space<vmem>>, vector<2x6x144xf32>
    %c0_8 = arith.constant 0 : index
    %c4 = arith.constant 4 : index
    %c0_9 = arith.constant 0 : index
    %3 = vector.load %arg4[%c0_8, %c4, %c0_9] : memref<2x10x144xf32, #tpu.memory_space<vmem>>, vector<2x6x144xf32>
    tpu.vector_store %arg4[%c0_8, %c4, %c0_9], %2 {strides = array<i32>} : memref<2x10x144xf32, #tpu.memory_space<vmem>>, vector<2x6x144xf32>,
    return
  }
  func.func @transform_0(%arg0: i32, %arg1: i32) -> (i32, i32, i32) {
    %c0_i32 = arith.constant 0 : i32
    %c0_i32_0 = arith.constant 0 : i32
    return %arg0, %c0_i32, %arg1 : i32, i32, i32
  }
  func.func @transform_1(%arg0: i32, %arg1: i32) -> (i32, i32, i32) {
    %c0_i32 = arith.constant 0 : i32
    %c0_i32_0 = arith.constant 0 : i32
    return %arg0, %c0_i32, %arg1 : i32, i32, i32
  }
  func.func @transform_2(%arg0: i32, %arg1: i32) -> (i32, i32, i32) {
    %c0_i32 = arith.constant 0 : i32
    %c0_i32_0 = arith.constant 0 : i32
    return %arg0, %c0_i32, %arg1 : i32, i32, i32
  }
}

</mosaic_0001>

<bundles_post_ra>
// kernel: tpu_custom_call.1
= control target key start
LH: loop header
LB: loop body
LE: loop exit
PB: predicated region body
PF: predicated region fallthrough
CT: control target
= control target key end

     0   :  { %vm20_vm0 = vcmask 125952   ;;  %vm41_vm1 = vcmask 130052   ;;  %vm44_vm2 = vcmask 123904   ;;  %s123_s0 = inlined_call_operand.vmem [shape: f32[2,4,144], index: 0, kind: input, shape index: {}]   ;;  %s124_s2 = inlined_call_operand.vmem [shape: f32[2,10,144], index: 2, kind: output, shape index: {}]   ;;  %s125_s1 = inlined_call_operand.vmem [shape: f32[2,6,144], index: 1, kind: input, shape index: {}]  }
   0x1   :  { %v11_v0 = vld [vmem:[%s123_s0] sm:$0xff]  ;;  %v12_v1 = vld [vmem:[%s123_s0 + $0x8] sm:$0xff]  ;;  %v26_v7 = vld [vmem:[%s125_s1 + $0x10] sm:$0x3f] }
   0x2   :  { %v24_v2 = vld [vmem:[%s125_s1] sm:$0x3f]  ;;  %v15_v3 = vcombine.high %v11_v0, %v11_v0  ;;  %19 = vst [vmem:[%s124_s2] sm:$0xf] %v11_v0  ;;  %v16_v4 = vcombine.high %v12_v1, %v12_v1  ;;  %22 = vst [vmem:[%s124_s2 + $0x20] sm:$0xf] %v12_v1  ;;  %v34_v9 = vrot.slane %v26_v7, 4 }
   0x3   :  { %v32_v5 = vrot.slane %v24_v2, 4  ;;  %v25_v6 = vld [vmem:[%s125_s1 + $0x8] sm:$0x3f]  ;;  %v27_v10 = vld [vmem:[%s125_s1 + $0x18] sm:$0x3f] }
   0x4   :  { %v33_v8 = vrot.slane %v25_v6, 4  ;;  %21 = vst.msk [vmem:[%s124_s2 + $0x8] sm:$0xf] %vm20_vm0, %v15_v3  ;;  %23 = vst.msk [vmem:[%s124_s2 + $0x28] sm:$0xf] %vm20_vm0, %v16_v4  ;;  %v35_v11 = vrot.slane %v27_v10, 4 }
   0x5   :  { %40 = vst [vmem:[%s124_s2 + $0x10] ss:$-12 sps:$4 sm:$0xf3] %v32_v5   ;;  %46 = vst [vmem:[%s124_s2 + $0x30] ss:$-12 sps:$4 sm:$0xf3] %v34_v9  }
   0x6   :  { %42 = vst.msk [vmem:[%s124_s2 + $0x8] sm:$0xf0] %vm41_vm1, %v33_v8  ;;  %47 = vst.msk [vmem:[%s124_s2 + $0x28] sm:$0xf0] %vm41_vm1, %v35_v11 }
   0x7   :  { %45 = vst.msk [vmem:[%s124_s2 + $0x18] sm:$0x3] %vm44_vm2, %v33_v8  ;;  %49 = vst.msk [vmem:[%s124_s2 + $0x38] sm:$0x3] %vm44_vm2, %v35_v11 }

</bundles_post_ra>
